<compile_context>
chip_gen: v7x
topology: tpu7x:2x2x1
jax: 0.10.0
libtpu: 0.0.40
codegen_flags: <defaults>
</compile_context>

<pallas_src>
import functools

import jax
import jax.numpy as jnp
from jax.experimental import pallas as pl
from jax.experimental.pallas import tpu as pltpu

EPS = 1e-5


def _res_graph_conv_kernel(x_ref, adj_ref,
                           w1_ref, g1_ref, be1_ref,
                           w2_ref, g2_ref, be2_ref,
                           o_ref, *, batch, joints, c_in, c_out):
    """x_ref/o_ref: (J, B*C) lane-dense f32.  adj_ref: (J, J) f32.  w*: bf16."""
    n_rows = float(batch * joints)
    adj = adj_ref[...]                                          # (J, J) f32

    def lanes_to_rows(v, c):
        # (J, B*c) -> (B*J, c); result row b*J + j holds batch b, joint j.
        return jnp.concatenate(
            [v[:, b * c:(b + 1) * c] for b in range(batch)], axis=0)

    def rows_to_lanes(v, c):
        # (B*J, c) -> (J, B*c)  (inverse of lanes_to_rows).
        return jnp.concatenate(
            [v[b * joints:(b + 1) * joints, :] for b in range(batch)], axis=1)

    def bn_relu_rows(h, gamma, beta):
        # BatchNorm1d training-mode biased stats over all B*J rows, per channel
        # (channel = lane), fused into one scale/shift FMA; rsqrt on the EUP.
        mean = jnp.sum(h, axis=0, keepdims=True) / n_rows
        mean_sq = jnp.sum(h * h, axis=0, keepdims=True) / n_rows
        var = jnp.maximum(mean_sq - mean * mean, 0.0)
        scale = jax.lax.rsqrt(var + EPS) * gamma
        shift = beta - mean * scale
        return jnp.maximum(h * scale + shift, 0.0)

    def bn_relu_lane_groups(h, gamma, beta, c):
        # Same BN, but h is (J, B*c) with channel ch living at lanes {b*c + ch}.
        col_sum = jnp.sum(h, axis=0, keepdims=True)             # (1, B*c)
        col_sq = jnp.sum(h * h, axis=0, keepdims=True)          # (1, B*c)
        ch_sum = col_sum[:, 0:c]
        ch_sq = col_sq[:, 0:c]
        for b in range(1, batch):                               # combine batch groups
            ch_sum = ch_sum + col_sum[:, b * c:(b + 1) * c]
            ch_sq = ch_sq + col_sq[:, b * c:(b + 1) * c]
        mean = ch_sum / n_rows
        var = jnp.maximum(ch_sq / n_rows - mean * mean, 0.0)
        scale = jax.lax.rsqrt(var + EPS) * gamma                # (1, c)
        shift = beta - mean * scale
        scale_t = jnp.concatenate([scale] * batch, axis=1)      # (1, B*c)
        shift_t = jnp.concatenate([shift] * batch, axis=1)
        return jnp.maximum(h * scale_t + shift_t, 0.0)

    # ---- Layer 1 (C_in -> C_hid): aggregate on narrow C_in lanes, then widen ----
    # (adj @ x) @ W1 == adj @ (x @ W1); gconv bias absorbed by BN mean subtraction.
    agg1 = jnp.dot(adj, x_ref[...],
                   preferred_element_type=jnp.float32)          # (J, B*C_in)
    h = lanes_to_rows(agg1, c_in)                               # (B*J, C_in)
    h = jnp.dot(h.astype(jnp.bfloat16), w1_ref[...],
                preferred_element_type=jnp.float32)             # (B*J, C_hid) f32 acc
    h = bn_relu_rows(h, g1_ref[...], be1_ref[...])

    # ---- Layer 2 (C_hid -> C_out): shrink with W2, then aggregate ----
    h = jnp.dot(h.astype(jnp.bfloat16), w2_ref[...],
                preferred_element_type=jnp.float32)             # (B*J, C_out)
    agg2 = jnp.dot(adj, rows_to_lanes(h, c_out),
                   preferred_element_type=jnp.float32)          # (J, B*C_out)
    h = bn_relu_lane_groups(agg2, g2_ref[...], be2_ref[...], c_out)

    # ---- Residual: re-read x (short live range), lane-dense store ----
    o_ref[...] = x_ref[...] + h


def res_graph_conv(x, adj, params):
    """x: (B, J, C) float32.  adj: (J, J) normalized adjacency.  Returns (B, J, C)."""
    B, J, C = x.shape

    # Layout plumbing stays in XLA: joints-major, lane-dense (J, B*C).
    x_g2 = jnp.transpose(x, (1, 0, 2)).reshape(J, B * C)

    kernel = functools.partial(_res_graph_conv_kernel,
                               batch=B, joints=J, c_in=C, c_out=C)
    vmem = pl.BlockSpec(memory_space=pltpu.MemorySpace.VMEM)
    args = (x_g2, adj,
            params["w1"].astype(jnp.bfloat16), params["g1"], params["be1"],
            params["w2"].astype(jnp.bfloat16), params["g2"], params["be2"])

    out_g2 = pl.pallas_call(
        kernel,
        out_shape=jax.ShapeDtypeStruct((J, B * C), jnp.float32),
        in_specs=[vmem] * len(args),
        out_specs=vmem,
        compiler_params=pltpu.CompilerParams(
            vmem_limit_bytes=32 * 1024 * 1024),
    )(*args)
    return out_g2.reshape(J, B, C).transpose(1, 0, 2)


def reference(x, adj, params):
    """Pure-JAX reference matching the PyTorch module (incl. gconv biases)."""
    def layer(h, w, b, g, be):
        h = jnp.einsum("bjc,cd->bjd", h, w)
        h = jnp.einsum("jk,bkd->bjd", adj, h) + b[0]
        mean = jnp.mean(h, axis=(0, 1), keepdims=True)
        var = jnp.mean((h - mean) ** 2, axis=(0, 1), keepdims=True)
        h = (h - mean) / jnp.sqrt(var + EPS)
        h = h * g[0] + be[0]
        return jnp.maximum(h, 0.0)
    out = layer(x, params["w1"], params["b1"], params["g1"], params["be1"])
    out = layer(out, params["w2"], params["b2"], params["g2"], params["be2"])
    return x + out


def build_adjacency(num_joints):
    """Deterministic chain graph + self loops, symmetric normalization."""
    a = jnp.eye(num_joints, dtype=jnp.float32)
    off = jnp.eye(num_joints, k=1, dtype=jnp.float32)
    a = a + off + off.T
    deg = jnp.sum(a, axis=1)
    d_inv_sqrt = 1.0 / jnp.sqrt(deg)
    return a * d_inv_sqrt[:, None] * d_inv_sqrt[None, :]


if __name__ == "__main__":
    # Small shapes consistent with the module: batch=2, joints=16,
    # input_dim=output_dim=16 (residual requires equality), hid_dim=32,
    # p_dropout=None (dropout branch is identity / absent).
    B, J, C_IN, C_HID = 2, 16, 16, 32
    C_OUT = C_IN

    key = jax.random.PRNGKey(0)
    k = jax.random.split(key, 9)

    x = jax.random.normal(k[0], (B, J, C_IN), dtype=jnp.float32)
    adj = build_adjacency(J)

    params = {
        # gconv1: C_IN -> C_HID, gconv2: C_HID -> C_OUT.  b1/b2 are only used by the
        # reference; the kernel drops them (exactly absorbed by training-mode BN).
        "w1": jax.random.normal(k[1], (C_IN, C_HID), dtype=jnp.float32) * 0.1,
        "b1": jax.random.normal(k[2], (1, C_HID), dtype=jnp.float32) * 0.01,
        "g1": 1.0 + 0.1 * jax.random.normal(k[3], (1, C_HID), dtype=jnp.float32),
        "be1": 0.1 * jax.random.normal(k[4], (1, C_HID), dtype=jnp.float32),
        "w2": jax.random.normal(k[5], (C_HID, C_OUT), dtype=jnp.float32) * 0.1,
        "b2": jax.random.normal(k[6], (1, C_OUT), dtype=jnp.float32) * 0.01,
        "g2": 1.0 + 0.1 * jax.random.normal(k[7], (1, C_OUT), dtype=jnp.float32),
        "be2": 0.1 * jax.random.normal(k[8], (1, C_OUT), dtype=jnp.float32),
    }

    out = jax.block_until_ready(res_graph_conv(x, adj, params))
    ref = jax.block_until_ready(reference(x, adj, params))

    assert out.shape == (B, J, C_OUT), out.shape
    max_err = float(jnp.max(jnp.abs(out - ref)))
    # Tolerance relaxed vs. the all-f32 reference because the feature matmuls use
    # bf16 operands (f32 accumulate); also validates the bias-absorbed-by-BN step.
    assert jnp.allclose(out, ref, atol=5e-2, rtol=5e-2), max_err
    print("KERNEL_OK")
</pallas_src>

<mosaic_0001>
module attributes {stable_mosaic.version = 11 : i64} {
  func.func @_res_graph_conv_kernel(%arg0: memref<16x32xf32, #tpu.memory_space<vmem>>, %arg1: memref<16x16xf32, #tpu.memory_space<vmem>>, %arg2: memref<16x32xbf16, #tpu.memory_space<vmem>>, %arg3: memref<1x32xf32, #tpu.memory_space<vmem>>, %arg4: memref<1x32xf32, #tpu.memory_space<vmem>>, %arg5: memref<32x16xbf16, #tpu.memory_space<vmem>>, %arg6: memref<1x16xf32, #tpu.memory_space<vmem>>, %arg7: memref<1x16xf32, #tpu.memory_space<vmem>>, %arg8: memref<16x32xf32, #tpu.memory_space<vmem>>) attributes {dimension_semantics = [], scalar_prefetch = 0 : i64, scratch_operands = 0 : i64, tpu.core_type = #tpu.core_type<tc>} {
    %c0 = arith.constant 0 : index
    %c0_0 = arith.constant 0 : index
    %0 = vector.load %arg1[%c0, %c0_0] : memref<16x16xf32, #tpu.memory_space<vmem>>, vector<16x16xf32>
    %c0_1 = arith.constant 0 : index
    %c0_2 = arith.constant 0 : index
    %1 = vector.load %arg0[%c0_1, %c0_2] : memref<16x32xf32, #tpu.memory_space<vmem>>, vector<16x32xf32>
    %cst = arith.constant dense<0.000000e+00> : vector<16x32xf32>
    %2 = tpu.matmul %0, %1, %cst {dimension_numbers = #tpu.dot_dimension_numbers<[1], [0], [0], [1], [0, 0, 1, 1], [], []>} : vector<16x16xf32>, vector<16x32xf32>, vector<16x32xf32> -> vector<16x32xf32>
    %3 = vector.extract_strided_slice %2 {offsets = [0, 0], sizes = [16, 16], strides = [1, 1]} : vector<16x32xf32> to vector<16x16xf32>
    %4 = vector.extract_strided_slice %2 {offsets = [0, 16], sizes = [16, 16], strides = [1, 1]} : vector<16x32xf32> to vector<16x16xf32>
    %5 = tpu.concatenate %3, %4 in 0 : vector<16x16xf32>, vector<16x16xf32> -> vector<32x16xf32>
    %6 = arith.truncf %5 : vector<32x16xf32> to vector<32x16xbf16>
    %c0_3 = arith.constant 0 : index
    %c0_4 = arith.constant 0 : index
    %7 = vector.load %arg2[%c0_3, %c0_4] : memref<16x32xbf16, #tpu.memory_space<vmem>>, vector<16x32xbf16>
    %cst_5 = arith.constant dense<0.000000e+00> : vector<32x32xf32>
    %8 = tpu.matmul %6, %7, %cst_5 {dimension_numbers = #tpu.dot_dimension_numbers<[1], [0], [0], [1], [0, 0, 1, 1], [], []>} : vector<32x16xbf16>, vector<16x32xbf16>, vector<32x32xf32> -> vector<32x32xf32>
    %c0_6 = arith.constant 0 : index
    %c0_7 = arith.constant 0 : index
    %9 = vector.load %arg3[%c0_6, %c0_7] : memref<1x32xf32, #tpu.memory_space<vmem>>, vector<1x32xf32>
    %c0_8 = arith.constant 0 : index
    %c0_9 = arith.constant 0 : index
    %10 = vector.load %arg4[%c0_8, %c0_9] : memref<1x32xf32, #tpu.memory_space<vmem>>, vector<1x32xf32>
    %cst_10 = arith.constant dense<0.000000e+00> : vector<32xf32>
    %11 = vector.multi_reduction <add>, %8, %cst_10 [0] : vector<32x32xf32> to vector<32xf32>
    %12 = vector.shape_cast %11 : vector<32xf32> to vector<1x32xf32>
    %cst_11 = arith.constant 3.200000e+01 : f32
    %13 = vector.broadcast %cst_11 : f32 to vector<1x32xf32>
    %14 = arith.divf %12, %13 : vector<1x32xf32>
    %15 = arith.mulf %8, %8 : vector<32x32xf32>
    %cst_12 = arith.constant dense<0.000000e+00> : vector<32xf32>
    %16 = vector.multi_reduction <add>, %15, %cst_12 [0] : vector<32x32xf32> to vector<32xf32>
    %17 = vector.shape_cast %16 : vector<32xf32> to vector<1x32xf32>
    %cst_13 = arith.constant 3.200000e+01 : f32
    %18 = vector.broadcast %cst_13 : f32 to vector<1x32xf32>
    %19 = arith.divf %17, %18 : vector<1x32xf32>
    %20 = arith.mulf %14, %14 : vector<1x32xf32>
    %21 = arith.subf %19, %20 : vector<1x32xf32>
    %cst_14 = arith.constant 0.000000e+00 : f32
    %22 = vector.broadcast %cst_14 : f32 to vector<1x32xf32>
    %23 = arith.maximumf %21, %22 : vector<1x32xf32>
    %cst_15 = arith.constant 9.99999974E-6 : f32
    %24 = vector.broadcast %cst_15 : f32 to vector<1x32xf32>
    %25 = arith.addf %23, %24 : vector<1x32xf32>
    %26 = math.rsqrt %25 : vector<1x32xf32>
    %27 = arith.mulf %26, %9 : vector<1x32xf32>
    %28 = arith.mulf %14, %27 : vector<1x32xf32>
    %29 = arith.subf %10, %28 : vector<1x32xf32>
    %30 = vector.broadcast %27 : vector<1x32xf32> to vector<32x32xf32>
    %31 = arith.mulf %8, %30 : vector<32x32xf32>
    %32 = vector.broadcast %29 : vector<1x32xf32> to vector<32x32xf32>
    %33 = arith.addf %31, %32 : vector<32x32xf32>
    %cst_16 = arith.constant 0.000000e+00 : f32
    %34 = vector.broadcast %cst_16 : f32 to vector<32x32xf32>
    %35 = arith.maximumf %33, %34 : vector<32x32xf32>
    %36 = arith.truncf %35 : vector<32x32xf32> to vector<32x32xbf16>
    %c0_17 = arith.constant 0 : index
    %c0_18 = arith.constant 0 : index
    %37 = vector.load %arg5[%c0_17, %c0_18] : memref<32x16xbf16, #tpu.memory_space<vmem>>, vector<32x16xbf16>
    %cst_19 = arith.constant dense<0.000000e+00> : vector<32x16xf32>
    %38 = tpu.matmul %36, %37, %cst_19 {dimension_numbers = #tpu.dot_dimension_numbers<[1], [0], [0], [1], [0, 0, 1, 1], [], []>} : vector<32x32xbf16>, vector<32x16xbf16>, vector<32x16xf32> -> vector<32x16xf32>
    %39 = vector.extract_strided_slice %38 {offsets = [0, 0], sizes = [16, 16], strides = [1, 1]} : vector<32x16xf32> to vector<16x16xf32>
    %40 = vector.extract_strided_slice %38 {offsets = [16, 0], sizes = [16, 16], strides = [1, 1]} : vector<32x16xf32> to vector<16x16xf32>
    %41 = tpu.concatenate %39, %40 in 1 : vector<16x16xf32>, vector<16x16xf32> -> vector<16x32xf32>
    %cst_20 = arith.constant dense<0.000000e+00> : vector<16x32xf32>
    %42 = tpu.matmul %0, %41, %cst_20 {dimension_numbers = #tpu.dot_dimension_numbers<[1], [0], [0], [1], [0, 0, 1, 1], [], []>} : vector<16x16xf32>, vector<16x32xf32>, vector<16x32xf32> -> vector<16x32xf32>
    %c0_21 = arith.constant 0 : index
    %c0_22 = arith.constant 0 : index
    %43 = vector.load %arg6[%c0_21, %c0_22] : memref<1x16xf32, #tpu.memory_space<vmem>>, vector<1x16xf32>
    %c0_23 = arith.constant 0 : index
    %c0_24 = arith.constant 0 : index
    %44 = vector.load %arg7[%c0_23, %c0_24] : memref<1x16xf32, #tpu.memory_space<vmem>>, vector<1x16xf32>
    %cst_25 = arith.constant dense<0.000000e+00> : vector<32xf32>
    %45 = vector.multi_reduction <add>, %42, %cst_25 [0] : vector<16x32xf32> to vector<32xf32>
    %46 = vector.shape_cast %45 : vector<32xf32> to vector<1x32xf32>
    %47 = arith.mulf %42, %42 : vector<16x32xf32>
    %cst_26 = arith.constant dense<0.000000e+00> : vector<32xf32>
    %48 = vector.multi_reduction <add>, %47, %cst_26 [0] : vector<16x32xf32> to vector<32xf32>
    %49 = vector.shape_cast %48 : vector<32xf32> to vector<1x32xf32>
    %50 = vector.extract_strided_slice %46 {offsets = [0, 0], sizes = [1, 16], strides = [1, 1]} : vector<1x32xf32> to vector<1x16xf32>
    %51 = vector.extract_strided_slice %49 {offsets = [0, 0], sizes = [1, 16], strides = [1, 1]} : vector<1x32xf32> to vector<1x16xf32>
    %52 = vector.extract_strided_slice %46 {offsets = [0, 16], sizes = [1, 16], strides = [1, 1]} : vector<1x32xf32> to vector<1x16xf32>
    %53 = arith.addf %50, %52 : vector<1x16xf32>
    %54 = vector.extract_strided_slice %49 {offsets = [0, 16], sizes = [1, 16], strides = [1, 1]} : vector<1x32xf32> to vector<1x16xf32>
    %55 = arith.addf %51, %54 : vector<1x16xf32>
    %cst_27 = arith.constant 3.200000e+01 : f32
    %56 = vector.broadcast %cst_27 : f32 to vector<1x16xf32>
    %57 = arith.divf %53, %56 : vector<1x16xf32>
    %cst_28 = arith.constant 3.200000e+01 : f32
    %58 = vector.broadcast %cst_28 : f32 to vector<1x16xf32>
    %59 = arith.divf %55, %58 : vector<1x16xf32>
    %60 = arith.mulf %57, %57 : vector<1x16xf32>
    %61 = arith.subf %59, %60 : vector<1x16xf32>
    %cst_29 = arith.constant 0.000000e+00 : f32
    %62 = vector.broadcast %cst_29 : f32 to vector<1x16xf32>
    %63 = arith.maximumf %61, %62 : vector<1x16xf32>
    %cst_30 = arith.constant 9.99999974E-6 : f32
    %64 = vector.broadcast %cst_30 : f32 to vector<1x16xf32>
    %65 = arith.addf %63, %64 : vector<1x16xf32>
    %66 = math.rsqrt %65 : vector<1x16xf32>
    %67 = arith.mulf %66, %43 : vector<1x16xf32>
    %68 = arith.mulf %57, %67 : vector<1x16xf32>
    %69 = arith.subf %44, %68 : vector<1x16xf32>
    %70 = tpu.concatenate %67, %67 in 1 : vector<1x16xf32>, vector<1x16xf32> -> vector<1x32xf32>
    %71 = tpu.concatenate %69, %69 in 1 : vector<1x16xf32>, vector<1x16xf32> -> vector<1x32xf32>
    %72 = vector.broadcast %70 : vector<1x32xf32> to vector<16x32xf32>
    %73 = arith.mulf %42, %72 : vector<16x32xf32>
    %74 = vector.broadcast %71 : vector<1x32xf32> to vector<16x32xf32>
    %75 = arith.addf %73, %74 : vector<16x32xf32>
    %cst_31 = arith.constant 0.000000e+00 : f32
    %76 = vector.broadcast %cst_31 : f32 to vector<16x32xf32>
    %77 = arith.maximumf %75, %76 : vector<16x32xf32>
    %c0_32 = arith.constant 0 : index
    %c0_33 = arith.constant 0 : index
    %78 = vector.load %arg0[%c0_32, %c0_33] : memref<16x32xf32, #tpu.memory_space<vmem>>, vector<16x32xf32>
    %79 = arith.addf %78, %77 : vector<16x32xf32>
    %c0_34 = arith.constant 0 : index
    %c0_35 = arith.constant 0 : index
    %80 = vector.load %arg8[%c0_34, %c0_35] : memref<16x32xf32, #tpu.memory_space<vmem>>, vector<16x32xf32>
    tpu.vector_store %arg8[%c0_34, %c0_35], %79 {strides = array<i32>} : memref<16x32xf32, #tpu.memory_space<vmem>>, vector<16x32xf32>,
    return
  }
}

</mosaic_0001>

<bundles_post_ra>
// kernel: tpu_custom_call.1
= control target key start
LH: loop header
LB: loop body
LE: loop exit
PB: predicated region body
PF: predicated region fallthrough
CT: control target
= control target key end

     0   :  { %13 = vsyncpa [#allocation3], 0  ;;  %s811_s0 = inlined_call_operand.vmem [shape: f32[16,32], index: 0, kind: input, shape index: {}]   ;;  %s812_s1 = inlined_call_operand.hbm [shape: f32[16,16], index: 1, kind: input, shape index: {}]   ;;  %s813_s2 = inlined_call_operand.vmem [shape: bf16[16,32], index: 2, kind: input, shape index: {}]   ;;  %s814_s3 = inlined_call_operand.vmem [shape: f32[1,32], index: 3, kind: input, shape index: {}]   ;;  %s815_s4 = inlined_call_operand.vmem [shape: f32[1,32], index: 4, kind: input, shape index: {}]   ;;  %s816_s5 = inlined_call_operand.vmem [shape: bf16[32,16], index: 5, kind: input, shape index: {}]   ;;  %s817_s6 = inlined_call_operand.vmem [shape: f32[1,16], index: 6, kind: input, shape index: {}]   ;;  %s818_s7 = inlined_call_operand.vmem [shape: f32[1,16], index: 7, kind: input, shape index: {}]   ;;  %s819_s8 = inlined_call_operand.hbm [shape: f32[16,32], index: 8, kind: output, shape index: {}]  }
   0x1   :  { %14 = vsyncpa [#allocation4], 0  ;;  %s652_s27 = smov [#allocation2]   ;;  %s604_s9 = scalar_lea.hbm %s812_s1, 256 }
   0x2   :  { %s22_s28 = sshll.u32 %s652_s27, 4  ;;  %p605_p0 = scmp.ne.s32.totalorder %s812_s1, %s604_s9  ;;  %s23_s28 = int_to_ptr.vmem [resolvable:$true] %s22_s28 }
   0x3   :  { %p608_p1 = scmp.lt.u32.totalorder %s604_s9, %s812_s1 }
   0x5   :  { %p610_p2 = pnand %p608_p1, %p605_p0 }
   0x7   :  { %613 = shalt.err (!%p610_p2)
}
   0x8   :  { %s614_s14 = scalar_lea.vmem %s23_s28, 256  ;;  %p619_p4 = scmp.lt.s32.totalorder %s23_s28, %s23_s28 }
   0x9   :  { %p615_p3 = scmp.ne.s32.totalorder %s23_s28, %s614_s14  ;;  %p620_p5 = scmp.lt.s32.totalorder %s614_s14, %s614_s14 }
   0xb   :  { %p621_p6 = por %p620_p5, %p619_p4 }
   0xd   :  { %p622_p7 = pnand %p621_p6, %p615_p3 }
   0xf   :  { %625 = shalt.err (!%p622_p7)
}
  0x10   :  { %s653_s15 = smov 128   ;;  %s654_s16 = smov 8  }
  0x11   :  { %28 = dma.hbm_to_vmem [thread:$0]  %s812_s1, 256, %s23_s28, [#allocation3], %s653_s15, %s653_s15, %s654_s16  }
  0x12   :  { %648 = dma.done.wait [#allocation3], 256  }
  0x13   :  { %649 = vsyncadd [#allocation3], 4294967040  ;;  %vm49_vm0 = vcmask 130048   ;;  %v721_v0 = vld [vmem:[%s811_s0] sm:$0xff]  ;;  %v726_v1 = vld [vmem:[%s811_s0 + $0x8] sm:$0xff]  ;;  %s655_s0 = smov 112   ;;  %v248_v56 = vlaneseq }
  0x14   :  { %v45_v2 = vld [vmem:[#allocation2] sm:$0xff]  ;;  %v573_v3 = vpack.c.bf16 %v726_v1, %v721_v0  ;;  %v731_v4 = vld [vmem:[#allocation2 + $0x8] sm:$0xff]  ;;  %vm206_vm1 = vcmask 261120  }
  0x15   :  { %549 = vmatprep.mubr.msk.f32.mxu0 %vm49_vm0, %v45_v2  ;;  %v597_v5 = vld [vmem:[%s813_s2] sm:$0xff]   ;;  %v599_v15 = vld [vmem:[%s816_s5 + $0x8] sm:$0xff]   ;;  %v249_v57 = vshrl.u32 %v248_v56, 7 }
  0x16   :  { %574 = vmatprep.subr.bf16.mxu0 %v573_v3  ;;  %552 = vmatprep.subr.bf16.mxu1 %v597_v5  ;;  %v598_v14 = vld [vmem:[%s816_s5] sm:$0xff]  }
  0x17   :  { %576 = vmatpush3.bf16.msra.mxu0 %v573_v3  ;;  %553 = vmatpush3.bf16.msra.mxu1 %v597_v5  ;;  %v204_v58 = vld [vmem:[%s814_s3] sm:$0x1]  ;;  %v759_v59 = vsub.s32 0, %v249_v57  ;;  %s656_s3 = smov 16  }
  0x18   :  { %558 = vmatprep.subr.bf16.mxu0 %v598_v14  ;;  %v205_v62 = vld [vmem:[%s815_s4] sm:$0x1] }
  0x1a   :  { %550 = vmatmul.mubr.msk.f32.vlgmr.msra.gmra.mrb[0].mxu0 %vm49_vm0, %v731_v4 }
  0x1b   :  { %559 = vmatpush3.bf16.msra.mxu0 %v598_v14 }
  0x1c   :  { %560 = vmatprep.subr.bf16.mxu0 %v599_v15 }
  0x1f   :  { %561 = vmatpush3.bf16.msra.mxu0 %v599_v15 }
  0xed   :  { %v551_v6 = vpop.f32.mrb[0].mxu0 }
  0xee   :  { %v122_v7 = vpop.f32.mrb[1].mxu0 }
  0xef   :  { %v587_v8 = vpack.i.bf16 %v551_v6, %v122_v7  ;;  %v139_v9 = vpack.c.bf16 %v551_v6, %v122_v7 }
  0xf1   :  { %588 = vrot.lane.b32.xlu0 %v587_v8, %s655_s0  ;;  %554 = vmatprep.mubr.msk.bf16.mxu1 %vm49_vm0, %v139_v9 }
 0x163   :  { %v589_v10 = vpop.permute.xlu0 %588 }
 0x164   :  { %v591_v11 = vunpack.i.h.bf16 %v589_v10  ;;  %v590_v12 = vunpack.i.l.bf16 %v589_v10 }
 0x166   :  { %v140_v13 = vpack.c.bf16 %v591_v11, %v590_v12 }
 0x168   :  { %555 = vmatmul.mubr.msk.bf16.vlgmr.msra.gmra.mrb[0].mxu1 %vm49_vm0, %v140_v13 }
 0x169   :  { %570 = vmatprep.mubr.msk.f32.mxu1 %vm49_vm0, %v45_v2 }
 0x23b   :  { %v556_v16 = vpop.f32.mrb[0].mxu1 }
 0x23c   :  { %v189_v17 = vpop.f32.mrb[1].mxu1  ;;  %v224_v21 = vmul.f32 %v556_v16, %v556_v16  ;;  %v210_v26 = vsel %vm206_vm1, %v556_v16, 0.0 }
 0x23d   :  { %v222_v18 = vmul.f32 %v189_v17, %v189_v17  ;;  %v557_v19 = vpop.f32.mrb[2].mxu1  ;;  %v207_v22 = vsel %vm206_vm1, %v189_v17, 0.0 }
 0x23e   :  { %v192_v20 = vpop.f32.mrb[3].mxu1  ;;  %v225_v28 = vmul.f32 %v557_v19, %v557_v19  ;;  %v229_v32 = vsel %vm206_vm1, %v224_v21, 0.0  ;;  %v212_v33 = vsel %vm206_vm1, %v557_v19, 0.0 }
 0x23f   :  { %v208_v23 = vsel %vm206_vm1, %v192_v20, 0.0  ;;  %v223_v24 = vmul.f32 %v192_v20, %v192_v20  ;;  %v226_v27 = vsel %vm206_vm1, %v222_v18, 0.0 }
 0x240   :  { %v209_v25 = vadd.f32 %v208_v23, %v207_v22  ;;  %v231_v36 = vsel %vm206_vm1, %v225_v28, 0.0 }
 0x241   :  { %v227_v29 = vsel %vm206_vm1, %v223_v24, 0.0 }
 0x242   :  { %v211_v30 = vadd.f32 %v210_v26, %v209_v25  ;;  %v228_v31 = vadd.f32 %v227_v29, %v226_v27 }
 0x244   :  { %v213_v34 = vadd.f32 %v212_v33, %v211_v30  ;;  %v230_v35 = vadd.f32 %v229_v32, %v228_v31 }
 0x246   :  { %v214_v37 = vrot.slane %v213_v34, 4  ;;  %v232_v38 = vadd.f32 %v231_v36, %v230_v35 }
 0x248   :  { %v215_v39 = vadd.f32 %v214_v37, %v213_v34  ;;  %v233_v40 = vrot.slane %v232_v38, 4 }
 0x24a   :  { %v216_v41 = vrot.slane %v215_v39, 2  ;;  %v234_v42 = vadd.f32 %v233_v40, %v232_v38 }
 0x24c   :  { %v217_v43 = vadd.f32 %v216_v41, %v215_v39  ;;  %v235_v44 = vrot.slane %v234_v42, 2 }
 0x24e   :  { %v218_v45 = vrot.slane %v217_v43, 1  ;;  %v236_v46 = vadd.f32 %v235_v44, %v234_v42 }
 0x250   :  { %v219_v47 = vadd.f32 %v218_v45, %v217_v43  ;;  %v237_v48 = vrot.slane %v236_v46, 1 }
 0x252   :  { %v221_v49 = vmul.f32 0.03125, %v219_v47  ;;  %v238_v50 = vadd.f32 %v237_v48, %v236_v46 }
 0x254   :  { %v239_v51 = vmul.f32 0.03125, %v238_v50  ;;  %v240_v52 = vmul.f32 %v221_v49, %v221_v49 }
 0x256   :  { %v241_v53 = vsub.f32 %v239_v51, %v240_v52 }
 0x258   :  { %v242_v54 = vmax.f32 %v241_v53, 0.0 }
 0x25a   :  { %v243_v55 = vadd.f32 1e-05, %v242_v54 }
 0x25c   :  { %600 = vrsqrt.f32 %v243_v55 }
 0x266   :  { %v601_v60 = vpop.eup %600 }
 0x267   :  { %v245_v61 = vmul.f32 %v601_v60, %v204_v58 }
 0x269   :  { %v246_v63 = vmul.f32 %v245_v61, %v221_v49  ;;  %v251_v2 = vrot.slane %v245_v61, %v759_v59 }
 0x26b   :  { %v247_v3 = vsub.f32 %v205_v62, %v246_v63  ;;  %v253_v5 = vmul.f32 %v251_v2, %v192_v20  ;;  %v252_v6 = vmul.f32 %v251_v2, %v189_v17  ;;  %v254_v7 = vmul.f32 %v556_v16, %v251_v2  ;;  %v428_v63 = vld [vmem:[%s817_s6] sm:$0x1]  ;;  %s657_s6 = smov [#allocation5]  }
 0x26c   :  { %v255_v8 = vmul.f32 %v557_v19, %v251_v2 }
 0x26d   :  { %v260_v9 = vrot.slane %v247_v3, %v759_v59 }
 0x26f   :  { %v263_v10 = vadd.f32 %v260_v9, %v253_v5  ;;  %v262_v11 = vadd.f32 %v260_v9, %v252_v6  ;;  %v264_v12 = vadd.f32 %v260_v9, %v254_v7  ;;  %v265_v13 = vadd.f32 %v260_v9, %v255_v8  ;;  %v429_v5 = vld [vmem:[%s818_s7] sm:$0x1]  ;;  %s507_s7 = sshll.u32 %s657_s6, 4  ;;  %s508_s7 = int_to_ptr.vmem [resolvable:$true] %s507_s7 }
 0x270   :  { %s626_s11 = scalar_lea.vmem %s508_s7, 256  ;;  %p631_p9 = scmp.lt.s32.totalorder %s508_s7, %s508_s7 }
 0x271   :  { %v267_v14 = vmax.f32 %v263_v10, 0.0  ;;  %v266_v15 = vmax.f32 %v262_v11, 0.0  ;;  %v268_v18 = vmax.f32 %v264_v12, 0.0  ;;  %v269_v21 = vmax.f32 %v265_v13, 0.0  ;;  %p627_p8 = scmp.ne.s32.totalorder %s508_s7, %s626_s11  ;;  %p632_p10 = scmp.lt.s32.totalorder %s626_s11, %s626_s11 }
 0x273   :  { %v270_v22 = vpack.c.bf16 %v267_v14, %v266_v15  ;;  %v271_v23 = vpack.c.bf16 %v269_v21, %v268_v18  ;;  %p633_p11 = por %p632_p10, %p631_p9 }
 0x275   :  { %562 = vmatprep.mubr.msk.bf16.mxu0 %vm206_vm1, %v270_v22  ;;  %p634_p12 = pnand %p633_p11, %p627_p8 }
 0x276   :  { %563 = vmatmul.mubr.msk.bf16.vlgmr.msra.gmra.mrb[4].mxu0 %vm206_vm1, %v271_v23 }
 0x349   :  { %v564_v20 = vpop.f32.mrb[4].mxu0 }
 0x34a   :  { %v328_v17 = vpop.f32.mrb[5].mxu0 }
 0x34b   :  { %v565_v16 = vpop.f32.mrb[6].mxu0 }
 0x34c   :  { %v592_v19 = vpack.i.bf16 %v565_v16, %v564_v20  ;;  %v331_v24 = vpop.f32.mrb[7].mxu0 }
 0x34e   :  { %593 = vrot.lane.b32.xlu0 %v592_v19, %s656_s3 }
 0x3c0   :  { %v594_v25 = vpop.permute.xlu0 %593 }
 0x3c1   :  { %v596_v26 = vunpack.i.h.bf16 %v594_v25  ;;  %v595_v27 = vunpack.i.l.bf16 %v594_v25 }
 0x3c3   :  { %v351_v28 = vsel %vm49_vm0, %v328_v17, %v595_v27  ;;  %v352_v29 = vsel %vm49_vm0, %v331_v24, %v596_v26 }
 0x3c4   :  { %v577_v30 = vpack.c.bf16 %v352_v29, %v351_v28 }
 0x3c6   :  { %578 = vmatprep.subr.bf16.mxu1 %v577_v30 }
 0x3c7   :  { %580 = vmatpush3.bf16.msra.mxu1 %v577_v30 }
 0x3ca   :  { %571 = vmatmul.mubr.msk.f32.vlgmr.msra.gmra.mrb[4].mxu1 %vm49_vm0, %v731_v4 }
 0x49d   :  { %v572_v31 = vpop.f32.mrb[4].mxu1 }
 0x49e   :  { %v431_v32 = vsel %vm206_vm1, %v572_v31, 0.0  ;;  %v440_v33 = vmul.f32 %v572_v31, %v572_v31  ;;  %v419_v34 = vpop.f32.mrb[5].mxu1 }
 0x49f   :  { %v430_v35 = vsel %vm206_vm1, %v419_v34, 0.0  ;;  %v439_v36 = vmul.f32 %v419_v34, %v419_v34 }
 0x4a0   :  { %v442_v37 = vsel %vm206_vm1, %v440_v33, 0.0  ;;  %v432_v38 = vadd.f32 %v431_v32, %v430_v35 }
 0x4a1   :  { %v441_v39 = vsel %vm206_vm1, %v439_v36, 0.0 }
 0x4a2   :  { %v433_v40 = vrot.slane %v432_v38, 4  ;;  %v443_v41 = vadd.f32 %v442_v37, %v441_v39 }
 0x4a4   :  { %v434_v42 = vadd.f32 %v433_v40, %v432_v38  ;;  %v444_v43 = vrot.slane %v443_v41, 4 }
 0x4a6   :  { %v445_v44 = vadd.f32 %v444_v43, %v443_v41  ;;  %v435_v45 = vrot.slane %v434_v42, 2 }
 0x4a8   :  { %v436_v4 = vadd.f32 %v435_v45, %v434_v42  ;;  %v446_v46 = vrot.slane %v445_v44, 2 }
 0x4aa   :  { %v437_v47 = vrot.slane %v436_v4, 1  ;;  %v447_v48 = vadd.f32 %v446_v46, %v445_v44 }
 0x4ac   :  { %v438_v49 = vadd.f32 %v437_v47, %v436_v4  ;;  %v448_v50 = vrot.slane %v447_v48, 1 }
 0x4ae   :  { %451 = vrot.lane.b32.xlu1 %v438_v49, %s655_s0  ;;  %v449_v51 = vadd.f32 %v448_v50, %v447_v48 }
 0x4b2   :  { %456 = vrot.lane.b32.xlu1 %v449_v51, %s655_s0 }
 0x520   :  { %v452_v52 = vpop.permute.xlu1 %451 }
 0x521   :  { %v454_v53 = vadd.f32 %v452_v52, %v438_v49 }
 0x523   :  { %v460_v54 = vmul.f32 0.03125, %v454_v53 }
 0x524   :  { %v457_v55 = vpop.permute.xlu1 %456 }
 0x525   :  { %v459_v56 = vadd.f32 %v457_v55, %v449_v51  ;;  %v462_v57 = vmul.f32 %v460_v54, %v460_v54 }
 0x527   :  { %v461_v58 = vmul.f32 0.03125, %v459_v56 }
 0x529   :  { %v463_v60 = vsub.f32 %v461_v58, %v462_v57 }
 0x52b   :  { %v464_v61 = vmax.f32 %v463_v60, 0.0 }
 0x52d   :  { %v465_v62 = vadd.f32 1e-05, %v464_v61 }
 0x52f   :  { %602 = vrsqrt.f32 %v465_v62 }
 0x539   :  { %v603_v2 = vpop.eup %602 }
 0x53a   :  { %v467_v3 = vmul.f32 %v603_v2, %v428_v63 }
 0x53c   :  { %471 = vrot.lane.b32.xlu0 %v467_v3, %s656_s3  ;;  %v468_v6 = vmul.f32 %v467_v3, %v460_v54 }
 0x53e   :  { %v469_v7 = vsub.f32 %v429_v5, %v468_v6 }
 0x540   :  { %v479_v8 = vrot.slane %v469_v7, %v759_v59 }
 0x542   :  { %480 = vrot.lane.b32.xlu1 %v479_v8, %s656_s3 }
 0x5ae   :  { %v472_v9 = vpop.permute.xlu0 %471 }
 0x5af   :  { %v474_v10 = vsel %vm49_vm0, %v467_v3, %v472_v9 }
 0x5b0   :  { %v487_v11 = vrot.slane %v474_v10, %v759_v59 }
 0x5b2   :  { %v488_v14 = vmul.f32 %v487_v11, %v419_v34  ;;  %v489_v15 = vmul.f32 %v572_v31, %v487_v11 }
 0x5b4   :  { %v481_v12 = vpop.permute.xlu1 %480 }
 0x5b5   :  { %v483_v13 = vsel %vm49_vm0, %v469_v7, %v481_v12 }
 0x5b6   :  { %v493_v18 = vrot.slane %v483_v13, %v759_v59 }
 0x5b8   :  { %v494_v21 = vadd.f32 %v493_v18, %v488_v14  ;;  %v495_v22 = vadd.f32 %v493_v18, %v489_v15 }
 0x5ba   :  { %v496_v23 = vmax.f32 %v494_v21, 0.0  ;;  %v497_v20 = vmax.f32 %v495_v22, 0.0 }
 0x5bc   :  { %v498_v17 = vadd.f32 %v496_v23, %v721_v0  ;;  %v499_v16 = vadd.f32 %v497_v20, %v726_v1 }
 0x5be   :  { %500 = vst.msk [vmem:[#allocation5] sm:$0xff] %vm206_vm1, %v498_v17  ;;  %501 = vst.msk [vmem:[#allocation5 + $0x8] sm:$0xff] %vm206_vm1, %v499_v16 }
 0x5bf   :  { %637 = shalt.err (!%p634_p12)
}
 0x5c0   :  { %s638_s14 = scalar_lea.hbm %s819_s8, 256 }
 0x5c1   :  { %p639_p13 = scmp.ne.s32.totalorder %s819_s8, %s638_s14  ;;  %p642_p0 = scmp.lt.u32.totalorder %s638_s14, %s819_s8 }
 0x5c3   :  { %p644_p1 = pnand %p642_p0, %p639_p13 }
 0x5c5   :  { %647 = shalt.err (!%p644_p1)
}
 0x5c6   :  { %513 = dma.vmem_to_hbm [thread:$0]  %s508_s7, 256, %s819_s8, [#allocation4], %s653_s15, %s653_s15, %s654_s16  }
 0x5c7   :  { %650 = dma.done.wait [#allocation4], 256  }
 0x5c8   :  { %651 = vsyncadd [#allocation4], 4294967040 }
 0x5c9   :  { %517 = vsyncpa [#allocation3], 1 }
 0x5ca   :  { %518 = vsyncpa [#allocation4], 1 }

</bundles_post_ra>
